<compile_context>
chip_gen: v6e
topology: v6e:2x2x1
jax: 0.10.0
libtpu: 0.0.40
codegen_flags: <defaults>
</compile_context>

<pallas_src>
import functools

import jax
import jax.numpy as jnp
from jax.experimental import pallas as pl
from jax.experimental.pallas import tpu as pltpu


# ----------------------------------------------------------------------------
# Pallas kernels
# ----------------------------------------------------------------------------
def _sigmoid(z):
    # explicit formulation (exp + divide) — guaranteed Mosaic lowering
    return 1.0 / (1.0 + jnp.exp(-z))


def _softmax_over_instances(score):
    """Softmax over the instance (sublane) axis of a (D, 1) column."""
    m = jnp.max(score, axis=0, keepdims=True)           # (1, 1)
    e = jnp.exp(score - m)                               # (D, 1)
    inv = pl.reciprocal(jnp.sum(e, axis=0, keepdims=True), approx=True)
    return e * inv                                       # (D, 1)


def _write_outputs(vbar_ref, packed_ref, x, a, prob, raw):
    # Vbar = A @ x : weighted sum over instances (VPU mul + XLU sublane reduce)
    vbar_ref[0] = jnp.sum(a * x, axis=0, keepdims=True)  # (1, H), lane-dense
    # Single packed aux output block (D, 3): [prob | raw | A]
    packed_ref[0, :, 0:1] = prob
    packed_ref[0, :, 1:2] = raw
    packed_ref[0, :, 2:3] = a


def _attn_pool_linear_kernel(x_ref, w_ref, b_ref, vbar_ref, packed_ref,
                             *, attn_stru, c):
    """attn_stru in {'tanh','sigmoid'}: score = Linear(512,1)(x)."""
    x = x_ref[0]                                          # (D, H)
    w = w_ref[...]                                        # (1, H)
    # raw = x @ w.T + b  done on the VPU/XLU (no N=1 MXU dot)
    raw = jnp.sum(x * w, axis=-1, keepdims=True) + b_ref[...]   # (D, 1)

    if attn_stru == "tanh":
        score = c * jnp.tanh(raw * (1.0 / c))   # PyTorch softmaxes this quantity
        prob = score * (0.5 / c) + 0.5          # (prob/c + 1)/2
    else:  # "sigmoid"
        score = _sigmoid(raw)                   # PyTorch softmaxes sigmoid(raw)
        prob = score

    a = _softmax_over_instances(score)
    _write_outputs(vbar_ref, packed_ref, x, a, prob, raw)


def _attn_pool_mlp_kernel(x_ref, w1_ref, b1_ref, w2_ref, b2_ref,
                          vbar_ref, packed_ref):
    """attn_stru == 'none': score = Linear(128,1)(tanh(Linear(512,128)(x)))."""
    x = x_ref[0]                                                   # (D, H)
    h = jnp.tanh(
        jnp.dot(x, w1_ref[...], preferred_element_type=jnp.float32)
        + b1_ref[...]
    )                                                              # (D, 128)
    raw = jnp.sum(h * w2_ref[...], axis=-1, keepdims=True) + b2_ref[...]  # (D,1)

    prob = _sigmoid(raw)
    a = _softmax_over_instances(raw)            # PyTorch softmaxes raw here
    _write_outputs(vbar_ref, packed_ref, x, a, prob, raw)


# ----------------------------------------------------------------------------
# Wrapper
# ----------------------------------------------------------------------------
def attention_pooling(x, params, *, attn_stru="tanh", c=1.0):
    """x: (D, 512) or (B, D, 512). Returns (Vbar, (prob, raw, A)) like PyTorch."""
    squeeze = x.ndim == 2
    if squeeze:
        x = x[None]
    B, D, H = x.shape

    out_shape = (
        jax.ShapeDtypeStruct((B, 1, H), jnp.float32),   # Vbar
        jax.ShapeDtypeStruct((B, D, 3), jnp.float32),   # packed [prob|raw|A]
    )
    out_specs = (
        pl.BlockSpec((1, 1, H), lambda b: (b, 0, 0)),
        pl.BlockSpec((1, D, 3), lambda b: (b, 0, 0)),
    )
    x_spec = pl.BlockSpec((1, D, H), lambda b: (b, 0, 0))

    def rep(shape):  # replicated (per-bag-invariant) operand
        return pl.BlockSpec(shape, lambda b: (0,) * len(shape))

    cparams = pltpu.CompilerParams(dimension_semantics=("parallel",))

    if attn_stru in ("tanh", "sigmoid"):
        kern = functools.partial(
            _attn_pool_linear_kernel, attn_stru=attn_stru, c=float(c))
        vbar, packed = pl.pallas_call(
            kern,
            out_shape=out_shape,
            grid=(B,),
            in_specs=[x_spec, rep((1, H)), rep((1, 1))],
            out_specs=out_specs,
            compiler_params=cparams,
        )(x, params["attn_w"], params["attn_b"])
    elif attn_stru == "none":
        vbar, packed = pl.pallas_call(
            _attn_pool_mlp_kernel,
            out_shape=out_shape,
            grid=(B,),
            in_specs=[x_spec, rep((H, 128)), rep((1, 128)),
                      rep((1, 128)), rep((1, 1))],
            out_specs=out_specs,
            compiler_params=cparams,
        )(x, params["oa_w1"], params["oa_b1"], params["oa_w2"], params["oa_b2"])
    else:
        raise ValueError(f"unknown attn_stru: {attn_stru}")

    # PyTorch returns raw/prob/A transposed to (..., 1, D); this is a pure
    # re-indexing of the tiny packed array, done outside the kernel.
    prob = packed[:, :, 0][:, None, :]
    raw = packed[:, :, 1][:, None, :]
    A = packed[:, :, 2][:, None, :]
    if squeeze:
        vbar, prob, raw, A = vbar[0], prob[0], raw[0], A[0]
    return vbar, (prob, raw, A)


# ----------------------------------------------------------------------------
# Pure-JAX reference (mirrors the PyTorch forward) + param init
# ----------------------------------------------------------------------------
def attention_pooling_ref(x, params, *, attn_stru="tanh", c=1.0):
    if attn_stru == "tanh":
        raw = x @ params["attn_w"].T + params["attn_b"].reshape(-1)
        raw = jnp.swapaxes(raw, -1, -2)
        prob = c * jnp.tanh(raw / c)
        A = jax.nn.softmax(prob, axis=-1)
        prob = (prob / c + 1.0) / 2.0
    elif attn_stru == "sigmoid":
        raw = x @ params["attn_w"].T + params["attn_b"].reshape(-1)
        raw = jnp.swapaxes(raw, -1, -2)
        prob = jax.nn.sigmoid(raw)
        A = jax.nn.softmax(prob, axis=-1)
    else:  # "none"
        h = jnp.tanh(x @ params["oa_w1"] + params["oa_b1"].reshape(-1))
        raw = h @ params["oa_w2"].T + params["oa_b2"].reshape(-1)
        raw = jnp.swapaxes(raw, -1, -2)
        A = jax.nn.softmax(raw, axis=-1)
        prob = jax.nn.sigmoid(raw)
    vbar = A @ x
    return vbar, (prob, raw, A)


def init_params(key, H=512, Hmid=128):
    """PyTorch-default-like init (uniform +-1/sqrt(fan_in))."""
    def uniform(k, shape, fan_in):
        bound = float(fan_in) ** -0.5
        return jax.random.uniform(k, shape, jnp.float32, -bound, bound)

    ks = jax.random.split(key, 6)
    return {
        "attn_w": uniform(ks[0], (1, H), H),        # nn.Linear(512, 1) weight (1,512)
        "attn_b": uniform(ks[1], (1, 1), H),
        "oa_w1": uniform(ks[2], (H, Hmid), H),      # nn.Linear(512,128), pre-transposed
        "oa_b1": uniform(ks[3], (1, Hmid), H),
        "oa_w2": uniform(ks[4], (1, Hmid), Hmid),   # nn.Linear(128, 1) weight (1,128)
        "oa_b2": uniform(ks[5], (1, 1), Hmid),
    }


if __name__ == "__main__":
    key = jax.random.PRNGKey(0)
    kp, kx = jax.random.split(key)
    params = init_params(kp)

    B, D, H = 2, 16, 512                      # small: 2 bags, 16 instances, hidden 512
    x = jax.random.normal(kx, (B, D, H), jnp.float32)

    for stru in ("tanh", "sigmoid", "none"):
        vbar, (prob, raw, A) = attention_pooling(x, params, attn_stru=stru, c=1.0)
        jax.block_until_ready((vbar, prob, raw, A))
        assert vbar.shape == (B, 1, H)
        assert prob.shape == (B, 1, D) and raw.shape == (B, 1, D) and A.shape == (B, 1, D)

        vb_r, (p_r, r_r, a_r) = attention_pooling_ref(x, params, attn_stru=stru, c=1.0)
        for got, ref in ((vbar, vb_r), (prob, p_r), (raw, r_r), (A, a_r)):
            assert bool(jnp.allclose(got, ref, rtol=1e-2, atol=1e-3)), stru

    # unbatched (D, 512) path, as used by the MIL model
    vbar1, (prob1, raw1, A1) = attention_pooling(x[0], params, attn_stru="tanh", c=1.0)
    jax.block_until_ready((vbar1, prob1, raw1, A1))
    assert vbar1.shape == (1, H) and prob1.shape == (1, D)
    assert raw1.shape == (1, D) and A1.shape == (1, D)

    print("KERNEL_OK")
</pallas_src>

<mosaic_0001>
module attributes {stable_mosaic.version = 11 : i64} {
  func.func @_attn_pool_linear_kernel(%arg0: i32, %arg1: memref<1x16x512xf32, #tpu.memory_space<vmem>>, %arg2: memref<1x512xf32, #tpu.memory_space<vmem>>, %arg3: memref<1x1xf32, #tpu.memory_space<vmem>>, %arg4: memref<1x1x512xf32, #tpu.memory_space<vmem>>, %arg5: memref<1x16x3xf32, #tpu.memory_space<vmem>>) attributes {dimension_semantics = [#tpu.dimension_semantics<parallel>], iteration_bounds = array<i64: 2>, scalar_prefetch = 0 : i64, scratch_operands = 0 : i64, tpu.core_type = #tpu.core_type<tc>, window_params = [{transform_indices = @transform_0, window_bounds = array<i64: 1, 16, 512>}, {pipeline_mode = #tpu.pipeline_mode<synchronous>, transform_indices = @transform_1, window_bounds = array<i64: 1, 512>}, {pipeline_mode = #tpu.pipeline_mode<synchronous>, transform_indices = @transform_2, window_bounds = array<i64: 1, 1>}, {transform_indices = @transform_3, window_bounds = array<i64: 1, 1, 512>}, {transform_indices = @transform_4, window_bounds = array<i64: 1, 16, 3>}]} {
    %c0 = arith.constant 0 : index
    %c0_0 = arith.constant 0 : index
    %c0_1 = arith.constant 0 : index
    %0 = vector.load %arg1[%c0, %c0_0, %c0_1] : memref<1x16x512xf32, #tpu.memory_space<vmem>>, vector<1x16x512xf32>
    %1 = vector.shape_cast %0 : vector<1x16x512xf32> to vector<16x512xf32>
    %c0_2 = arith.constant 0 : index
    %c0_3 = arith.constant 0 : index
    %2 = vector.load %arg2[%c0_2, %c0_3] : memref<1x512xf32, #tpu.memory_space<vmem>>, vector<1x512xf32>
    %3 = vector.broadcast %2 : vector<1x512xf32> to vector<16x512xf32>
    %4 = arith.mulf %1, %3 : vector<16x512xf32>
    %cst = arith.constant dense<0.000000e+00> : vector<16xf32>
    %5 = vector.multi_reduction <add>, %4, %cst [1] : vector<16x512xf32> to vector<16xf32>
    %6 = vector.shape_cast %5 : vector<16xf32> to vector<16x1xf32>
    %c0_4 = arith.constant 0 : index
    %c0_5 = arith.constant 0 : index
    %7 = vector.load %arg3[%c0_4, %c0_5] : memref<1x1xf32, #tpu.memory_space<vmem>>, vector<1x1xf32>
    %8 = vector.broadcast %7 : vector<1x1xf32> to vector<16x1xf32>
    %9 = arith.addf %6, %8 : vector<16x1xf32>
    %cst_6 = arith.constant 1.000000e+00 : f32
    %10 = vector.broadcast %cst_6 : f32 to vector<16x1xf32>
    %11 = arith.mulf %9, %10 : vector<16x1xf32>
    %12 = math.tanh %11 : vector<16x1xf32>
    %cst_7 = arith.constant 1.000000e+00 : f32
    %13 = vector.broadcast %cst_7 : f32 to vector<16x1xf32>
    %14 = arith.mulf %13, %12 : vector<16x1xf32>
    %cst_8 = arith.constant 5.000000e-01 : f32
    %15 = vector.broadcast %cst_8 : f32 to vector<16x1xf32>
    %16 = arith.mulf %14, %15 : vector<16x1xf32>
    %cst_9 = arith.constant 5.000000e-01 : f32
    %17 = vector.broadcast %cst_9 : f32 to vector<16x1xf32>
    %18 = arith.addf %16, %17 : vector<16x1xf32>
    %cst_10 = arith.constant dense<0xFF800000> : vector<1xf32>
    %19 = vector.multi_reduction <maximumf>, %14, %cst_10 [0] : vector<16x1xf32> to vector<1xf32>
    %20 = vector.shape_cast %19 : vector<1xf32> to vector<1x1xf32>
    %21 = vector.broadcast %20 : vector<1x1xf32> to vector<16x1xf32>
    %22 = arith.subf %14, %21 : vector<16x1xf32>
    %23 = math.exp %22 : vector<16x1xf32>
    %cst_11 = arith.constant dense<0.000000e+00> : vector<1xf32>
    %24 = vector.multi_reduction <add>, %23, %cst_11 [0] : vector<16x1xf32> to vector<1xf32>
    %25 = vector.shape_cast %24 : vector<1xf32> to vector<1x1xf32>
    %26 = tpu.reciprocal %25 {approx = true} : vector<1x1xf32> -> vector<1x1xf32>
    %27 = vector.broadcast %26 : vector<1x1xf32> to vector<16x1xf32>
    %28 = arith.mulf %23, %27 : vector<16x1xf32>
    %29 = vector.broadcast %28 : vector<16x1xf32> to vector<16x512xf32>
    %30 = arith.mulf %29, %1 : vector<16x512xf32>
    %cst_12 = arith.constant dense<0.000000e+00> : vector<512xf32>
    %31 = vector.multi_reduction <add>, %30, %cst_12 [0] : vector<16x512xf32> to vector<512xf32>
    %32 = vector.shape_cast %31 : vector<512xf32> to vector<1x512xf32>
    %c0_13 = arith.constant 0 : index
    %c0_14 = arith.constant 0 : index
    %c0_15 = arith.constant 0 : index
    %33 = vector.load %arg4[%c0_13, %c0_14, %c0_15] : memref<1x1x512xf32, #tpu.memory_space<vmem>>, vector<1x1x512xf32>
    %34 = vector.shape_cast %33 : vector<1x1x512xf32> to vector<1x512xf32>
    %35 = vector.shape_cast %32 : vector<1x512xf32> to vector<1x1x512xf32>
    tpu.vector_store %arg4[%c0_13, %c0_14, %c0_15], %35 {strides = array<i32>} : memref<1x1x512xf32, #tpu.memory_space<vmem>>, vector<1x1x512xf32>,
    %c0_16 = arith.constant 0 : index
    %c0_17 = arith.constant 0 : index
    %c0_18 = arith.constant 0 : index
    %36 = vector.load %arg5[%c0_16, %c0_17, %c0_18] : memref<1x16x3xf32, #tpu.memory_space<vmem>>, vector<1x16x1xf32>
    %37 = vector.shape_cast %36 : vector<1x16x1xf32> to vector<16x1xf32>
    %38 = vector.shape_cast %18 : vector<16x1xf32> to vector<1x16x1xf32>
    tpu.vector_store %arg5[%c0_16, %c0_17, %c0_18], %38 {strides = array<i32>} : memref<1x16x3xf32, #tpu.memory_space<vmem>>, vector<1x16x1xf32>,
    %c0_19 = arith.constant 0 : index
    %c0_20 = arith.constant 0 : index
    %c1 = arith.constant 1 : index
    %39 = vector.load %arg5[%c0_19, %c0_20, %c1] : memref<1x16x3xf32, #tpu.memory_space<vmem>>, vector<1x16x1xf32>
    %40 = vector.shape_cast %39 : vector<1x16x1xf32> to vector<16x1xf32>
    %41 = vector.shape_cast %9 : vector<16x1xf32> to vector<1x16x1xf32>
    tpu.vector_store %arg5[%c0_19, %c0_20, %c1], %41 {strides = array<i32>} : memref<1x16x3xf32, #tpu.memory_space<vmem>>, vector<1x16x1xf32>,
    %c0_21 = arith.constant 0 : index
    %c0_22 = arith.constant 0 : index
    %c2 = arith.constant 2 : index
    %42 = vector.load %arg5[%c0_21, %c0_22, %c2] : memref<1x16x3xf32, #tpu.memory_space<vmem>>, vector<1x16x1xf32>
    %43 = vector.shape_cast %42 : vector<1x16x1xf32> to vector<16x1xf32>
    %44 = vector.shape_cast %28 : vector<16x1xf32> to vector<1x16x1xf32>
    tpu.vector_store %arg5[%c0_21, %c0_22, %c2], %44 {strides = array<i32>} : memref<1x16x3xf32, #tpu.memory_space<vmem>>, vector<1x16x1xf32>,
    return
  }
  func.func @transform_0(%arg0: i32) -> (i32, i32, i32) {
    %c0_i32 = arith.constant 0 : i32
    %c0_i32_0 = arith.constant 0 : i32
    %c0_i32_1 = arith.constant 0 : i32
    return %arg0, %c0_i32, %c0_i32_0 : i32, i32, i32
  }
  func.func @transform_1(%arg0: i32) -> (i32, i32) {
    %c0_i32 = arith.constant 0 : i32
    %c0_i32_0 = arith.constant 0 : i32
    %c0_i32_1 = arith.constant 0 : i32
    return %c0_i32, %c0_i32_0 : i32, i32
  }
  func.func @transform_2(%arg0: i32) -> (i32, i32) {
    %c0_i32 = arith.constant 0 : i32
    %c0_i32_0 = arith.constant 0 : i32
    %c0_i32_1 = arith.constant 0 : i32
    return %c0_i32, %c0_i32_0 : i32, i32
  }
  func.func @transform_3(%arg0: i32) -> (i32, i32, i32) {
    %c0_i32 = arith.constant 0 : i32
    %c0_i32_0 = arith.constant 0 : i32
    %c0_i32_1 = arith.constant 0 : i32
    return %arg0, %c0_i32, %c0_i32_0 : i32, i32, i32
  }
  func.func @transform_4(%arg0: i32) -> (i32, i32, i32) {
    %c0_i32 = arith.constant 0 : i32
    %c0_i32_0 = arith.constant 0 : i32
    %c0_i32_1 = arith.constant 0 : i32
    return %arg0, %c0_i32, %c0_i32_0 : i32, i32, i32
  }
}

</mosaic_0001>

<bundles_post_ra>
// kernel: tpu_custom_call.1
= control target key start
LH: loop header
LB: loop body
LE: loop exit
PB: predicated region body
PF: predicated region fallthrough
CT: control target
= control target key end

     0   :  { %s1057_s0 = inlined_call_operand.hbm [shape: f32[2,16,512], index: 0, kind: input, shape index: {}]   ;;  %s1058_s1 = inlined_call_operand.hbm [shape: f32[1,512], index: 1, kind: input, shape index: {}]   ;;  %s1059_s2 = inlined_call_operand.<no memory space> [shape: f32[1,1], index: 2, kind: input, shape index: {}]   ;;  %s1060_s3 = inlined_call_operand.hbm [shape: f32[2,1,512], index: 3, kind: output, shape index: {0}]   ;;  %s1061_s4 = inlined_call_operand.vmem [shape: f32[2,16,3], index: 4, kind: output, shape index: {1}]  }
   0x1   :  { %v10_v0 = vstv %s1059_s2 }
   0x2   :  { %11 = vst [vmem:[#allocation2] sm:$0x1] %v10_v0 }
   0x3   :  { %12 = vsyncpa [#allocation4], 0 }
   0x4   :  { %14 = vsyncpa [#allocation4 + $0x1], 0 }
   0x5   :  { %15 = vsyncpa [#allocation7], 0 }
   0x6   :  { %16 = vsyncpa [#allocation5], 0 }
   0x7   :  { %18 = vsyncpa [#allocation5 + $0x1], 0  ;;  %s823_s17 = smov 0   ;;  %s825_s18 = smov 0  }
   0x8   :  { %s827_s19 = smov 0   ;;  %s829_s20 = smov 0  }
   0x9 LB: > { %s844_s2 = sadd.s32 4294967295, %s784_s20   ;;  %s565_s21 = sadd.s32 4294967294, %s784_s20   ;;  %s784_s20 = sphi %s829_s20, %s1084_s20   ;;  %s780_s19 = sphi %s827_s19, %s1083_s19   ;;  %s776_s18 = sphi %s825_s18, %s1082_s18   ;;  %s772_s17 = sphi %s823_s17, %s1081_s17  }
   0xa   : > { %s848_s22 = sadd.s32 1, %s784_s20   ;;  %s31_s23 = sadd.s32 1, %s780_s19 }
   0xb   : > { %s28_s24 = ssub.s32 %s784_s20, %s848_s22  ;;  %p38_p0 = scmp.ne.s32.totalorder %s780_s19, %s776_s18 }
   0xc   : > { %p29_p1 = scmp.eq.s32.totalorder %s28_s24, 0  ;;  %p39_p2 = scmp.eq.s32.totalorder %s784_s20, 0 }
   0xd   : > { %p44_p3 = scmp.ne.s32.totalorder %s776_s18, %s772_s17  ;;  %p1062_p4 = scmp.eq.s32.totalorder %s844_s2, 0 }
   0xe   : > { %s860_s25 = scalar_select %p29_p1, %s780_s19, %s31_s23  }
   0xf   : > { %p862_p5 = por %p39_p2, %p38_p0  ;;  %p868_p6 = por %p1062_p4, %p44_p3 }
  0x10   : > { %p110_p7 = scmp.eq.s32.totalorder %s844_s2, 1  ;;  %p116_p8 = scmp.eq.s32.totalorder %s565_s21, 1 }
  0x11   : > { %s1067_s27 = scalar_select %p868_p6, 1, 0 }
  0x12   : > { %p566_p9 = scmp.ge.s32.totalorder %s784_s20, 1  ;;  %p149_p10 = scmp.lt.s32.totalorder %s784_s20, 3 }
  0x13   : > { %p875_p11 = por %p110_p7, %p38_p0  ;;  %p879_p12 = por %p116_p8, %p44_p3 }
  0x14   : > { %p883_p13 = pnand %p566_p9, %p149_p10  ;;  %s786_s5 = smov [#allocation6]  }
  0x15   : > { %s1068_s28 = scalar_select %p875_p11, 1, 0 }
  0x16   : > { %s1069_s29 = scalar_select %p879_p12, 1, 0 }
  0x17   : > { %s1070_s30 = scalar_select %p883_p13, 1, 0 }
  0x18   : > { %p595_p2 = pneg %p883_p13  ;;  %s162_s6 = sshll.u32 %s786_s5, 4  ;;  %s163_s6 = int_to_ptr.vmem [resolvable:$true] %s162_s6 }
  0x19   : > { %p608_p4 = scmp.lt.s32.totalorder %s784_s20, 2  ;;  %p1071_p0 = scmp.eq.s32.totalorder %s844_s2, 0 }
  0x1a   : > { %s176_s8 = sand.u32 1, %s780_s19   ;;  %s673_s11 = scalar_lea.vmem %s163_s6, 64 }
  0x1b   : > { %p893_p7 = pnand %p595_p2, %p1071_p0  ;;  %p900_p3 = pnand %p608_p4, %p862_p5 }
  0x1c   : > { %s569_s10 = sshll.u32 %s176_s8, 6  ;;  %p674_p9 = scmp.ne.s32.totalorder %s163_s6, %s673_s11 }
  0x1d   : > { %p664_p8 = pneg %p893_p7  ;;  %p681_p12 = scmp.lt.s32.totalorder %s163_s6, %s163_s6 }
  0x1e   : > { %p682_p11 = scmp.lt.s32.totalorder %s673_s11, %s673_s11 }
  0x1f   : > { %p676_p10 = pnand %p674_p9, %p664_p8 }
  0x20   : > { %p683_p2 = por %p682_p11, %p681_p12 }
  0x21   : > { %p677_p1 = pneg %p676_p10 }
  0x23   : > { %p684_p0 = pnand %p683_p2, %p677_p1 }
  0x25   : > { %687 = shalt.err (!%p684_p0)
}
  0x26   : > { %598 = dma.hbm_to_vmem [thread:$0]  (!%p893_p7), %s1058_s1, 64, %s163_s6, [#allocation7]  }
  0x27   : > { %s584_s14 = sshll.u32 %s784_s20, 10  ;;  %s180_s15 = scalar_lea.vmem [#allocation3], %s569_s10 }
  0x28   : > { %s187_s16 = sshll.u32 %s180_s15, 4  ;;  %s915_s24 = scalar_lea.hbm %s1057_s0, %s584_s14  ;;  %s917_s16 = int_to_ptr.vmem [resolvable:$true] %s187_s16 }
  0x29   : > { %s919_s26 = scalar_lea.sflag [#allocation4], %s176_s8  ;;  %s688_s5 = scalar_lea.hbm %s915_s24, 1024 }
  0x2a   : > { %p689_p4 = scmp.ne.s32.totalorder %s915_s24, %s688_s5  ;;  %p690_p5 = pneg %p900_p3 }
  0x2b   : > { %s693_s10 = scalar_lea.hbm %s1057_s0, 2048  ;;  %p694_p1 = scmp.lt.s32.totalorder %s915_s24, %s1057_s0 }
  0x2c   : > { %p691_p11 = pnand %p690_p5, %p689_p4  ;;  %p695_p7 = scmp.lt.s32.totalorder %s693_s10, %s688_s5 }
  0x2e   : > { %p692_p12 = pneg %p691_p11  ;;  %p696_p8 = por %p695_p7, %p694_p1 }
  0x30   : > { %p697_p9 = pnand %p696_p8, %p692_p12 }
  0x32   : > { %700 = shalt.err (!%p697_p9)
}
  0x33   : > { %s701_s8 = scalar_lea.vmem %s917_s16, 1024  ;;  %s787_s13 = smov [#allocation3]  }
  0x34   : > { %p702_p10 = scmp.ne.s32.totalorder %s917_s16, %s701_s8  ;;  %s706_s14 = sshll.u32 %s787_s13, 4  ;;  %s707_s14 = int_to_ptr.vmem [resolvable:$false] %s706_s14 }
  0x35   : > { %s708_s15 = scalar_lea.vmem %s707_s14, 2048  ;;  %p709_p4 = scmp.lt.s32.totalorder %s917_s16, %s707_s14 }
  0x36   : > { %p704_p2 = pnand %p702_p10, %p690_p5  ;;  %p710_p11 = scmp.lt.s32.totalorder %s708_s15, %s701_s8 }
  0x38   : > { %p705_p0 = pneg %p704_p2  ;;  %p711_p6 = por %p710_p11, %p709_p4 }
  0x3a   : > { %p712_p13 = pnand %p711_p6, %p705_p0 }
  0x3c   : > { %715 = shalt.err (!%p712_p13)
}
  0x3d   : > { %s788_s21 = smov 512   ;;  %s789_s23 = smov 32  }
  0x3e   : > { %602 = dma.hbm_to_vmem [thread:$0]  (!%p900_p3), %s915_s24, 1024, %s917_s16, %s919_s26, %s788_s21, %s788_s21, %s789_s23  }
  0x3f   : > { %p1074_p5 = scmp.ne.s32.totalorder %s1070_s30, 0 }
  0x40   : > { %s943_s5 = sand.u32 (!%p1074_p5), 1, %s776_s18   ;;  %p1075_p6 = scmp.ne.s32.totalorder (!%p1074_p5), %s1067_s27, 0 }
  0x41   : > { %199 = sbr.rel (%p1074_p5) target bundleno = 478 (0x1de), region = 32  ;;  %s573_s6 = sshll.u32 (!%p1074_p5), %s943_s5, 6 }
  0x42   : > { %s202_s7 = scalar_lea.sflag (!%p1074_p5), [#allocation4], %s943_s5  ;;  %s205_s10 = scalar_lea.vmem (!%p1074_p5), [#allocation3], %s573_s6 }
  0x46   : > { %759 = dma.done.wait (%p1075_p6), %s202_s7, 1024  }
  0x47   : > { %761 = vsyncadd (%p1075_p6), %s202_s7, 4294966272  ;;  %p1076_p13 = scmp.eq.s32.totalorder %s844_s2, 0 }
  0x49   : > { %763 = dma.done.wait (%p1076_p13), [#allocation7], 64   ;;  %p1077_p3 = pmov %p1076_p13 }
  0x4a   : > { %v254_v1 = vlaneseq  ;;  %v962_v7 = vld [vmem:[%s205_s10] sm:$0xff]  ;;  %v964_v8 = vld [vmem:[%s205_s10 + $0x8] sm:$0xff]  ;;  %v966_v9 = vld [vmem:[%s205_s10 + $0x10] sm:$0xff]  ;;  %v790_v34 = vmov 0   ;;  %s791_s27 = smov 1   ;;  %p239_p12 = scmp.lt.s32.totalorder %s844_s2, 1 }
  0x4b   : > { %765 = vsyncadd (%p1077_p3), [#allocation7], 4294967232  ;;  %v252_v10 = vld [vmem:[#allocation6] sm:$0xf]  ;;  %v970_v16 = vld [vmem:[%s205_s10 + $0x28] sm:$0xff]  ;;  %650 = vset.pattern.permute.xlu1 %v790_v34  ;;  %651 = vset.pattern.permute.xlu0 %v790_v34  ;;  %vm307_vm0 = vcmask 7168  }
  0x4c   : > { %v956_v2 = vshrl.u32 %v254_v1, 7  ;;  %v968_v15 = vld [vmem:[%s205_s10 + $0x20] sm:$0xff]  ;;  %v972_v17 = vld [vmem:[%s205_s10 + $0x30] sm:$0xff]  ;;  %v974_v18 = vld [vmem:[%s205_s10 + $0x18] sm:$0xff]  ;;  %s240_s30 = scalar_select %p239_p12, %s844_s2, 1  ;;  %vm425_vm1 = vcmask 15368  }
  0x4d   : > { %v979_v22 = vld [vmem:[%s205_s10 + $0x38] sm:$0xff]  ;;  %s792_s11 = smov 2   ;;  %vm434_vm2 = vcmask 23568   ;;  %s575_s12 = sshll.u32 %s943_s5, 2  ;;  %vm412_vm3 = vcmp.lt.s32.totalorder %v254_v1, 512 }
  0x4e   : > { %v256_v3 = vsub.s32 0, %v956_v2  ;;  %v260_v4 = vsub.s32 1, %v956_v2  ;;  %v264_v5 = vsub.s32 2, %v956_v2  ;;  %v268_v6 = vsub.s32 3, %v956_v2  ;;  %v578_v35 = vld [vmem:[#allocation2] ss:$0 sm:$0xff] }
  0x4f   : > { %s585_s9 = sshll.u32 %s240_s30, 4  ;;  %s586_s8 = sshll.u32 %s844_s2, 6 }
  0x50   : > { %v257_v11 = vrot.slane %v252_v10, %v256_v3  ;;  %v261_v12 = vrot.slane %v252_v10, %v260_v4  ;;  %v265_v13 = vrot.slane %v252_v10, %v264_v5  ;;  %v269_v14 = vrot.slane %v252_v10, %v268_v6  ;;  %s992_s26 = scalar_lea.vmem %s1061_s4, %s585_s9  ;;  %s231_s13 = scalar_lea.vmem [#allocation8], %s575_s12 }
  0x51   : > { %s457_s14 = sshll.u32 %s231_s13, 4  ;;  %s455_s23 = scalar_lea.hbm %s1060_s3, %s586_s8  ;;  %s458_s14 = int_to_ptr.vmem [resolvable:$true] %s457_s14 }
  0x52   : > { %v274_v19 = vmul.f32 %v257_v11, %v962_v7  ;;  %v275_v20 = vmul.f32 %v261_v12, %v964_v8  ;;  %v276_v21 = vmul.f32 %v265_v13, %v966_v9  ;;  %v278_v23 = vmul.f32 %v257_v11, %v968_v15  ;;  %s438_s6 = scalar_lea.sflag [#allocation5], %s943_s5  ;;  %s716_s7 = scalar_lea.vmem %s458_s14, 64 }
  0x53   : > { %v279_v24 = vmul.f32 %v261_v12, %v970_v16  ;;  %v280_v25 = vmul.f32 %v265_v13, %v972_v17  ;;  %v277_v26 = vmul.f32 %v269_v14, %v974_v18  ;;  %v281_v30 = vmul.f32 %v269_v14, %v979_v22  ;;  %p717_p1 = scmp.ne.s32.totalorder %s458_s14, %s716_s7  ;;  %p1078_p7 = scmp.ne.s32.totalorder %s1068_s28, 0 }
  0x54   : > { %v282_v27 = vadd.f32 %v275_v20, %v274_v19  ;;  %s794_s10 = smov [#allocation8]  }
  0x55   : > { %v287_v28 = vadd.f32 %v279_v24, %v278_v23  ;;  %p718_p8 = pnand %p717_p1, %p1078_p7  ;;  %s720_s2 = sshll.u32 %s794_s10, 4  ;;  %s721_s2 = int_to_ptr.vmem [resolvable:$false] %s720_s2 }
  0x56   : > { %v283_v29 = vadd.f32 %v282_v27, %v276_v21  ;;  %p723_p10 = scmp.lt.s32.totalorder %s458_s14, %s721_s2 }
  0x57   : > { %v288_v31 = vadd.f32 %v287_v28, %v280_v25  ;;  %p719_p9 = pneg %p718_p8 }
  0x58   : > { %v284_v32 = vadd.f32 %v283_v29, %v277_v26 }
  0x59   : > { %v289_v33 = vadd.f32 %v288_v31, %v281_v30 }
  0x5a   : > { %285 = vadd.xlane.f32.xlu0 %v284_v32 }
  0x5e   : > { %290 = vadd.xlane.f32.xlu0 %v289_v33 }
  0xe3   : > { %v286_v36 = vpop.xlane.xlu0 %285 }
  0xe4   : > { %v299_v37 = vadd.f32 %v578_v35, %v286_v36 }
  0xe6   : > { %652 = vtanh.f32 %v299_v37  ;;  %419 = vrot.lane.b32.xlu0 %v299_v37, %s791_s27 }
  0xe7   : > { %v291_v38 = vpop.xlane.xlu0 %290 }
  0xe8   : > { %v300_v39 = vadd.f32 %v578_v35, %v291_v38 }
  0xea   : > { %654 = vtanh.f32 %v300_v39 }
  0xf3   : > { %v653_v40 = vpop.eup %652 }
  0xf4   : > { %v303_v41 = vmul.f32 0.5, %v653_v40  ;;  %v308_v44 = vsel %vm307_vm0, %v653_v40, -inf }
  0xf6   : > { %v305_v42 = vadd.f32 0.5, %v303_v41 }
  0xf7   : > { %v655_v43 = vpop.eup %654 }
  0xf8   : > { %v309_v45 = vsel %vm307_vm0, %v655_v43, -inf  ;;  %415 = vst.msk [vmem:[%s992_s26] sm:$0xff] %vm307_vm0, %v305_v42  ;;  %v304_v46 = vmul.f32 0.5, %v655_v43 }
  0xf9   : > { %v310_v47 = vmax.f32 %v308_v44, %v309_v45 }
  0xfa   : > { %v306_v48 = vadd.f32 0.5, %v304_v46 }
  0xfb   : > { %v311_v49 = vrot.slane %v310_v47, 4 }
  0xfc   : > { %416 = vst.msk [vmem:[%s992_s26 + $0x8] sm:$0xff] %vm307_vm0, %v306_v48 }
  0xfd   : > { %v312_v50 = vmax.f32 %v310_v47, %v311_v49 }
  0xff   : > { %v313_v51 = vrot.slane %v312_v50, 2 }
 0x101   : > { %v314_v52 = vmax.f32 %v312_v50, %v313_v51 }
 0x103   : > { %v315_v53 = vrot.slane %v314_v52, 1 }
 0x105   : > { %v316_v54 = vmax.f32 %v314_v52, %v315_v53 }
 0x107   : > { %v317_v55 = vsub.f32 %v653_v40, %v316_v54  ;;  %v318_v56 = vsub.f32 %v655_v43, %v316_v54 }
 0x109   : > { %v319_v57 = vmul.f32 1.442695, %v317_v55  ;;  %v321_v58 = vmul.f32 1.442695, %v318_v56 }
 0x10b   : > { %656 = vpow2.f32 %v319_v57 }
 0x10c   : > { %658 = vpow2.f32 %v321_v58 }
 0x118   : > { %v657_v59 = vpop.eup %656 }
 0x119   : > { %v659_v60 = vpop.eup %658  ;;  %v323_v61 = vsel %vm307_vm0, %v657_v59, 0.0 }
 0x11a   : > { %v324_v62 = vsel %vm307_vm0, %v659_v60, 0.0 }
 0x11b   : > { %v325_v63 = vadd.f32 %v324_v62, %v323_v61 }
 0x11d   : > { %v326_v0 = vrot.slane %v325_v63, 4 }
 0x11f   : > { %v327_v3 = vadd.f32 %v326_v0, %v325_v63 }
 0x121   : > { %v328_v4 = vrot.slane %v327_v3, 2 }
 0x123   : > { %v329_v5 = vadd.f32 %v328_v4, %v327_v3 }
 0x125   : > { %v330_v6 = vrot.slane %v329_v5, 1 }
 0x127   : > { %v331_v10 = vadd.f32 %v330_v6, %v329_v5 }
 0x129   : > { %660 = vrcp.f32 %v331_v10 }
 0x136   : > { %v661_v11 = vpop.eup %660 }
 0x137   : > { %v333_v12 = vmul.f32 %v661_v11, %v657_v59  ;;  %v334_v13 = vmul.f32 %v661_v11, %v659_v60 }
 0x139   : > { %337 = vperm.xlu1 %650, %v333_v12  }
 0x13d   : > { %342 = vperm.xlu1 %650, %v334_v13  }
 0x141   : > { %421 = vrot.lane.b32.xlu1 %v300_v39, %s791_s27  ;;  %s722_s27 = scalar_lea.vmem %s721_s2, 128 }
 0x142   : > { %p724_p2 = scmp.lt.s32.totalorder %s722_s27, %s716_s7 }
 0x144   : > { %p725_p0 = por %p724_p2, %p723_p10 }
 0x145   : > { %428 = vrot.lane.b32.xlu1 %v333_v12, %s792_s11 }
 0x146   : > { %p726_p4 = pnand %p725_p0, %p719_p9 }
 0x149   : > { %430 = vrot.lane.b32.xlu1 %v334_v13, %s792_s11 }
 0x158   : > { %v420_v14 = vpop.permute.xlu0 %419 }
 0x159   : > { %426 = vst.msk [vmem:[%s992_s26] sm:$0xff] %vm425_vm1, %v420_v14 }
 0x1b4   : > { %v338_v19 = vpop.permute.xlu1 %337 }
 0x1b5   : > { %v345_v20 = vmul.f32 %v338_v19, %v962_v7  ;;  %v346_v21 = vmul.f32 %v338_v19, %v964_v8  ;;  %v347_v23 = vmul.f32 %v338_v19, %v966_v9  ;;  %v348_v24 = vmul.f32 %v338_v19, %v974_v18 }
 0x1b8   : > { %v343_v25 = vpop.permute.xlu1 %342 }
 0x1b9   : > { %v349_v26 = vmul.f32 %v343_v25, %v968_v15  ;;  %v350_v27 = vmul.f32 %v343_v25, %v970_v16  ;;  %v351_v28 = vmul.f32 %v343_v25, %v972_v17  ;;  %v352_v29 = vmul.f32 %v343_v25, %v979_v22 }
 0x1ba   : > { %v793_v15 = vmov 1966171168  }
 0x1bb   : > { %v353_v30 = vadd.f32 %v349_v26, %v345_v20  ;;  %v360_v31 = vadd.f32 %v350_v27, %v346_v21  ;;  %v367_v32 = vadd.f32 %v351_v28, %v347_v23  ;;  %v374_v7 = vadd.f32 %v352_v29, %v348_v24 }
 0x1bc   : > { %v422_v33 = vpop.permute.xlu1 %421  ;;  %v388_v18 = vunpack.c.l.s4 %v793_v15 }
 0x1bd   : > { %v354_v8 = vrot.slane %v353_v30, 4  ;;  %v361_v34 = vrot.slane %v360_v31, 4  ;;  %v368_v9 = vrot.slane %v367_v32, 4  ;;  %v375_v35 = vrot.slane %v374_v7, 4  ;;  %427 = vst.msk [vmem:[%s992_s26 + $0x8] sm:$0xff] %vm425_vm1, %v422_v33 }
 0x1be   : > { %v389_v42 = vunpack.c.0.s8 %v388_v18 }
 0x1bf   : > { %v355_v16 = vadd.f32 %v354_v8, %v353_v30  ;;  %v362_v36 = vadd.f32 %v361_v34, %v360_v31  ;;  %v369_v17 = vadd.f32 %v368_v9, %v367_v32  ;;  %v376_v37 = vadd.f32 %v375_v35, %v374_v7 }
 0x1c0   : > { %v429_v22 = vpop.permute.xlu1 %428  ;;  %v392_v52 = vsub.s32 %v389_v42, %v956_v2 }
 0x1c1   : > { %v356_v38 = vrot.slane %v355_v16, 2  ;;  %v363_v39 = vrot.slane %v362_v36, 2  ;;  %v370_v40 = vrot.slane %v369_v17, 2  ;;  %v377_v41 = vrot.slane %v376_v37, 2  ;;  %435 = vst.msk [vmem:[%s992_s26] sm:$0xff] %vm434_vm2, %v429_v22 }
 0x1c3   : > { %v357_v43 = vadd.f32 %v356_v38, %v355_v16  ;;  %v364_v44 = vadd.f32 %v363_v39, %v362_v36  ;;  %v371_v45 = vadd.f32 %v370_v40, %v369_v17  ;;  %v378_v46 = vadd.f32 %v377_v41, %v376_v37 }
 0x1c4   : > { %v431_v47 = vpop.permute.xlu1 %430 }
 0x1c5   : > { %v358_v48 = vrot.slane %v357_v43, 1  ;;  %v365_v49 = vrot.slane %v364_v44, 1  ;;  %v372_v50 = vrot.slane %v371_v45, 1  ;;  %v379_v51 = vrot.slane %v378_v46, 1  ;;  %436 = vst.msk [vmem:[%s992_s26 + $0x8] sm:$0xff] %vm434_vm2, %v431_v47 }
 0x1c7   : > { %v359_v53 = vadd.f32 %v358_v48, %v357_v43  ;;  %v366_v54 = vadd.f32 %v365_v49, %v364_v44  ;;  %v373_v55 = vadd.f32 %v372_v50, %v371_v45  ;;  %v380_v56 = vadd.f32 %v379_v51, %v378_v46 }
 0x1c9   : > { %v385_v57 = vcombine.low %v359_v53, %v366_v54  ;;  %v386_v58 = vcombine.low %v373_v55, %v380_v56 }
 0x1cb   : > { %v393_v59 = vrot.slane %v385_v57, %v392_v52  ;;  %v400_v60 = vrot.slane %v386_v58, %v392_v52 }
 0x1cd   : > { %v401_v61 = vcombine.low %v393_v59, %v400_v60 }
 0x1cf   : > { %v408_v62 = vrot.slane %v401_v61, %v392_v52 }
 0x1d1   : > { %414 = vst.msk [vmem:[%s231_s13] sm:$0xf] %vm412_vm3, %v408_v62 }
 0x1d2   : > { %729 = shalt.err (!%p726_p4)
}
 0x1d3   : > { %s730_s30 = scalar_lea.hbm %s455_s23, 64  ;;  %s734_s16 = scalar_lea.hbm %s1060_s3, 128 }
 0x1d4   : > { %p731_p11 = scmp.ne.s32.totalorder %s455_s23, %s730_s30  ;;  %p735_p13 = scmp.lt.s32.totalorder %s455_s23, %s1060_s3 }
 0x1d5   : > { %p736_p3 = scmp.lt.s32.totalorder %s734_s16, %s730_s30 }
 0x1d6   : > { %p732_p5 = pnand %p731_p11, %p1078_p7 }
 0x1d7   : > { %p737_p12 = por %p736_p3, %p735_p13 }
 0x1d8   : > { %p733_p6 = pneg %p732_p5 }
 0x1da   : > { %p738_p1 = pnand %p737_p12, %p733_p6 }
 0x1dc   : > { %741 = shalt.err (!%p738_p1)
}
 0x1dd   : > { %593 = dma.vmem_to_hbm [thread:$0]  (%p1078_p7), %s458_s14, 64, %s455_s23, %s438_s6  }
 0x1de PF: > { %s472_s11 = sand.u32 1, %s772_s17   ;;  %p1079_p8 = scmp.ne.s32.totalorder %s1069_s29, 0 }
 0x1df   : > { %p1080_p9 = scmp.ge.s32.totalorder %s784_s20, 2  ;;  %s473_s12 = scalar_lea.sflag [#allocation5], %s472_s11 }
 0x1e1   : > { %p604_p10 = pnand %p1080_p9, %p1079_p8 }
 0x1e3   : > { %p605_p2 = pneg %p604_p10 }
 0x1e5   : > { %767 = dma.done.wait (%p605_p2), %s473_s12, 64  }
 0x1e6   : > { %769 = vsyncadd (%p605_p2), %s473_s12, 4294967232  ;;  %p21_p0 = scmp.ge.s32.totalorder %s848_s22, 4   ;;  %s1081_s17 = smov %s776_s18 }
 0x1e7   : > { %s1082_s18 = smov %s780_s19  ;;  %s1083_s19 = smov %s860_s25 }
 0x1e8   : > { %s1084_s20 = smov %s848_s22  ;;  %23 = sbr.rel (!%p21_p0) target bundleno = 9 (0x9), region = 93 }
 0x1ed   :  { %486 = vsyncpa [#allocation4], 1 }
 0x1ee   :  { %488 = vsyncpa [#allocation4 + $0x1], 1 }
 0x1ef   :  { %489 = vsyncpa [#allocation7], 1 }
 0x1f0   :  { %490 = vsyncpa [#allocation5], 1 }
 0x1f1   :  { %492 = vsyncpa [#allocation5 + $0x1], 1 }

</bundles_post_ra>
